<compile_context>
chip_gen: v5e
topology: v5e:2x2
jax: 0.10.0
libtpu: 0.0.40
codegen_flags: <defaults>
</compile_context>

<pallas_src>
import jax
import jax.numpy as jnp
import numpy as np
from jax.experimental import pallas as pl
from jax.experimental.pallas import tpu as pltpu


def _round_up(x, m):
    return (x + m - 1) // m * m


def _patch_embed_kernel(x_ref, w_ref, pos_ref, o_ref):
    # x_ref:   (TM, patch_dim)   row tile of patches, row 0 of the array is zeros (cls slot)
    # w_ref:   (patch_dim, dim_pad)  transposed Linear weight (grid-invariant block)
    # pos_ref: (TM, dim_pad)     fused add: [cls+pos[0] ; pos[1:]+bias]  (bf16 or f32)
    # o_ref:   (TM, dim_pad)     output tile (f32), full-tile lane-dense store
    acc = jnp.dot(x_ref[...], w_ref[...], preferred_element_type=jnp.float32)
    o_ref[...] = (acc + pos_ref[...].astype(jnp.float32)).astype(o_ref.dtype)


def image_embedder(img, weight, bias, cls_token, pos_embedding, *,
                   patch_size, compute_dtype=jnp.bfloat16):
    """img: (B, 3, H, W) f32.  weight: (dim, patch_dim) (nn.Linear layout).
    Returns (B, N + 1, dim) f32 (matches ImageEmbedder.forward with dropout p=0)."""
    B, C, H, W = img.shape
    p = patch_size
    h, w = H // p, W // p
    N = h * w
    patch_dim = C * p * p
    dim = weight.shape[0]
    n_rows = N + 1

    # einops 'b c (h p1) (w p2) -> b (h w) (p1 p2 c)' + a single leading zero row (cls slot).
    # The pad/cast fuse into the transpose producer; no separate activation pass.
    # TODO(synk): if profiling shows this rearrange as a standalone HBM pass, fuse it into
    # the kernel (memory_space=pl.ANY on img + strided make_async_copy per h-row).
    x = img.reshape(B, C, h, p, w, p)
    x = jnp.transpose(x, (0, 2, 4, 3, 5, 1))                # (B, h, w, p1, p2, c)
    patches = x.reshape(B, N, patch_dim)
    x_in = jnp.pad(patches, ((0, 0), (1, 0), (0, 0))).astype(compute_dtype)   # (B, N+1, patch_dim)

    # Fused per-row additive term (hoisted loop invariants, parameter-sized work only):
    #   row 0          : cls_token + pos[0]          (cls row: zero matmul row, no bias)
    #   rows 1..N      : pos[1:]   + linear bias
    pos = pos_embedding.reshape(-1, dim)[:n_rows].astype(jnp.float32)
    row0 = (cls_token.reshape(dim).astype(jnp.float32) + pos[0]).reshape(1, dim)
    pos_rows = jnp.concatenate([row0, pos[1:] + bias.reshape(1, dim)], axis=0)   # (N+1, dim)
    pos_dtype = jnp.float32 if compute_dtype == jnp.float32 else jnp.bfloat16
    pos_rows = pos_rows.astype(pos_dtype)

    w_t = jnp.transpose(weight).astype(compute_dtype)        # (patch_dim, dim)

    # Lane-dense output: pad dim to a multiple of 128 (only hits toy configs; ViT dims pass through).
    dim_pad = _round_up(dim, 128)
    if dim_pad != dim:
        w_t = jnp.pad(w_t, ((0, 0), (0, dim_pad - dim)))
        pos_rows = jnp.pad(pos_rows, ((0, 0), (0, dim_pad - dim)))

    # Row tiling: big tiles (memory-bound op), ragged last tile masked by Pallas.
    if n_rows <= 512:
        TM = n_rows                  # single full-extent row block (always layout-legal)
    else:
        TM = 512                     # multiple of 8; last tile ragged -> masked stores
    n_tiles = pl.cdiv(n_rows, TM)

    # Explicit VMEM budget (double-buffered tiles), capped v7x-safe.
    comp_bytes = jnp.dtype(compute_dtype).itemsize
    pos_bytes = jnp.dtype(pos_dtype).itemsize
    need = 2 * (TM * patch_dim * comp_bytes        # x tile
                + patch_dim * dim_pad * comp_bytes # weight block
                + TM * dim_pad * pos_bytes         # pos tile
                + TM * dim_pad * 4)                # output tile (f32)
    vmem_limit = int(min(max(need + (4 << 20), 16 << 20), 48 << 20))

    # Grid: (row_tile, batch) with batch innermost so the pos tile / weight block keep the
    # same block index across consecutive steps (no re-DMA per batch).
    # TODO(synk): for B == 1 with a single row tile on v7x, add a parallel column-split
    # grid axis over dim so both TensorCores get work.
    out = pl.pallas_call(
        _patch_embed_kernel,
        out_shape=jax.ShapeDtypeStruct((B, n_rows, dim_pad), jnp.float32),
        grid=(n_tiles, B),
        in_specs=[
            pl.BlockSpec((None, TM, patch_dim), lambda t, b: (b, t, 0)),
            pl.BlockSpec((patch_dim, dim_pad), lambda t, b: (0, 0)),
            pl.BlockSpec((TM, dim_pad), lambda t, b: (t, 0)),
        ],
        out_specs=pl.BlockSpec((None, TM, dim_pad), lambda t, b: (b, t, 0)),
        compiler_params=pltpu.CompilerParams(
            dimension_semantics=("parallel", "parallel"),
            vmem_limit_bytes=vmem_limit),
    )(x_in, w_t, pos_rows)

    # TODO(synk): nn.Dropout(p=0.0) is identity in eval / p=0; no-op here.
    return out if dim_pad == dim else out[..., :dim]


def reference(img, weight, bias, cls_token, pos_embedding, *, patch_size):
    B, C, H, W = img.shape
    p = patch_size
    h, w = H // p, W // p
    N = h * w
    dim = weight.shape[0]
    x = img.reshape(B, C, h, p, w, p)
    x = jnp.transpose(x, (0, 2, 4, 3, 5, 1)).reshape(B, N, C * p * p)
    x = x @ jnp.transpose(weight) + bias.reshape(1, 1, -1)
    cls = jnp.broadcast_to(cls_token.reshape(1, 1, dim), (B, 1, dim))
    x = jnp.concatenate([cls, x], axis=1)
    return x + pos_embedding.reshape(1, -1, dim)[:, : N + 1]


if __name__ == "__main__":
    # Small, module-consistent shapes.
    B = 2
    image_size = 16
    patch_size = 4
    dim = 32
    C = 3
    num_patches = (image_size // patch_size) ** 2          # 16
    patch_dim = C * patch_size ** 2                        # 48

    key = jax.random.PRNGKey(0)
    k_img, k_w, k_b, k_cls, k_pos = jax.random.split(key, 5)

    img = jax.random.normal(k_img, (B, C, image_size, image_size), dtype=jnp.float32)
    # nn.Linear(patch_dim, dim): weight (dim, patch_dim), bias (dim)
    weight = jax.random.normal(k_w, (dim, patch_dim), dtype=jnp.float32) * (patch_dim ** -0.5)
    bias = jax.random.normal(k_b, (dim,), dtype=jnp.float32) * 0.02
    cls_token = jax.random.normal(k_cls, (1, 1, dim), dtype=jnp.float32)
    pos_embedding = jax.random.normal(k_pos, (1, num_patches + 1, dim), dtype=jnp.float32)

    ref = reference(img, weight, bias, cls_token, pos_embedding, patch_size=patch_size)

    # Exact-semantics f32 path (tight tolerance).
    out_f32 = image_embedder(img, weight, bias, cls_token, pos_embedding,
                             patch_size=patch_size, compute_dtype=jnp.float32)
    out_f32 = jax.block_until_ready(out_f32)
    assert out_f32.shape == (B, num_patches + 1, dim)
    np.testing.assert_allclose(np.asarray(out_f32), np.asarray(ref), rtol=1e-5, atol=1e-5)

    # Default perf path: bf16 operands (x, W, pos), f32 accumulation (looser tolerance).
    out_bf16 = image_embedder(img, weight, bias, cls_token, pos_embedding,
                              patch_size=patch_size)
    out_bf16 = jax.block_until_ready(out_bf16)
    assert out_bf16.shape == (B, num_patches + 1, dim)
    np.testing.assert_allclose(np.asarray(out_bf16), np.asarray(ref), rtol=3e-2, atol=3e-2)

    print("KERNEL_OK")
</pallas_src>

<mosaic_0001>
module attributes {stable_mosaic.version = 11 : i64} {
  func.func @_patch_embed_kernel(%arg0: i32, %arg1: i32, %arg2: memref<1x17x48xf32, #tpu.memory_space<vmem>>, %arg3: memref<48x128xf32, #tpu.memory_space<vmem>>, %arg4: memref<17x128xf32, #tpu.memory_space<vmem>>, %arg5: memref<1x17x128xf32, #tpu.memory_space<vmem>>) attributes {dimension_semantics = [#tpu.dimension_semantics<parallel>, #tpu.dimension_semantics<parallel>], iteration_bounds = array<i64: 1, 2>, scalar_prefetch = 0 : i64, scratch_operands = 0 : i64, tpu.core_type = #tpu.core_type<tc>, window_params = [{transform_indices = @transform_0, window_bounds = array<i64: 1, 17, 48>}, {pipeline_mode = #tpu.pipeline_mode<synchronous>, transform_indices = @transform_1, window_bounds = array<i64: 48, 128>}, {transform_indices = @transform_2, window_bounds = array<i64: 17, 128>}, {transform_indices = @transform_3, window_bounds = array<i64: 1, 17, 128>}]} {
    %c0 = arith.constant 0 : index
    %c0_0 = arith.constant 0 : index
    %c0_1 = arith.constant 0 : index
    %0 = vector.load %arg2[%c0, %c0_0, %c0_1] : memref<1x17x48xf32, #tpu.memory_space<vmem>>, vector<1x17x48xf32>
    %1 = vector.shape_cast %0 : vector<1x17x48xf32> to vector<17x48xf32>
    %c0_2 = arith.constant 0 : index
    %c0_3 = arith.constant 0 : index
    %2 = vector.load %arg3[%c0_2, %c0_3] : memref<48x128xf32, #tpu.memory_space<vmem>>, vector<48x128xf32>
    %cst = arith.constant dense<0.000000e+00> : vector<17x128xf32>
    %3 = tpu.matmul %1, %2, %cst {dimension_numbers = #tpu.dot_dimension_numbers<[1], [0], [0], [1], [0, 0, 1, 1], [], []>} : vector<17x48xf32>, vector<48x128xf32>, vector<17x128xf32> -> vector<17x128xf32>
    %c0_4 = arith.constant 0 : index
    %c0_5 = arith.constant 0 : index
    %4 = vector.load %arg4[%c0_4, %c0_5] : memref<17x128xf32, #tpu.memory_space<vmem>>, vector<17x128xf32>
    %5 = arith.addf %3, %4 : vector<17x128xf32>
    %c0_6 = arith.constant 0 : index
    %c0_7 = arith.constant 0 : index
    %c0_8 = arith.constant 0 : index
    %6 = vector.load %arg5[%c0_6, %c0_7, %c0_8] : memref<1x17x128xf32, #tpu.memory_space<vmem>>, vector<1x17x128xf32>
    %7 = vector.shape_cast %6 : vector<1x17x128xf32> to vector<17x128xf32>
    %8 = vector.shape_cast %5 : vector<17x128xf32> to vector<1x17x128xf32>
    tpu.vector_store %arg5[%c0_6, %c0_7, %c0_8], %8 {strides = array<i32>} : memref<1x17x128xf32, #tpu.memory_space<vmem>>, vector<1x17x128xf32>,
    return
  }
  func.func @transform_0(%arg0: i32, %arg1: i32) -> (i32, i32, i32) {
    %c0_i32 = arith.constant 0 : i32
    %c0_i32_0 = arith.constant 0 : i32
    return %arg1, %arg0, %c0_i32 : i32, i32, i32
  }
  func.func @transform_1(%arg0: i32, %arg1: i32) -> (i32, i32) {
    %c0_i32 = arith.constant 0 : i32
    %c0_i32_0 = arith.constant 0 : i32
    %c0_i32_1 = arith.constant 0 : i32
    return %c0_i32, %c0_i32_0 : i32, i32
  }
  func.func @transform_2(%arg0: i32, %arg1: i32) -> (i32, i32) {
    %c0_i32 = arith.constant 0 : i32
    %c0_i32_0 = arith.constant 0 : i32
    return %arg0, %c0_i32 : i32, i32
  }
  func.func @transform_3(%arg0: i32, %arg1: i32) -> (i32, i32, i32) {
    %c0_i32 = arith.constant 0 : i32
    %c0_i32_0 = arith.constant 0 : i32
    return %arg1, %arg0, %c0_i32 : i32, i32, i32
  }
}

</mosaic_0001>

<bundles_post_ra>
// kernel: tpu_custom_call.1
= control target key start
LH: loop header
LB: loop body
LE: loop exit
PB: predicated region body
PF: predicated region fallthrough
CT: control target
= control target key end

     0   :  { %s479_s12 = smov 0   ;;  %s481_s13 = smov 0   ;;  %s542_s0 = inlined_call_operand.vmem [shape: f32[2,17,48], index: 0, kind: input, shape index: {}]   ;;  %s543_s1 = inlined_call_operand.vmem [shape: f32[48,128], index: 1, kind: input, shape index: {}]   ;;  %s544_s2 = inlined_call_operand.vmem [shape: f32[17,128], index: 2, kind: input, shape index: {}]   ;;  %s545_s3 = inlined_call_operand.vmem [shape: f32[2,17,128], index: 3, kind: output, shape index: {}]  }
   0x1   :  { %s483_s14 = smov 0  }
   0x2 LB: > { %s22_s15 = sadd.s32 1, %s453_s13  ;;  %p390_p0 = scmp.ge.s32.totalorder %s457_s14, 1  ;;  %s457_s14 = sphi %s483_s14, %s13_s14   ;;  %s453_s13 = sphi %s481_s13, %s547_s13   ;;  %s449_s12 = sphi %s479_s12, %s546_s12  }
   0x3   : > { %p23_p1 = scmp.ge.s32.totalorder %s22_s15, 2  ;;  %p169_p2 = scmp.lt.s32.totalorder %s457_s14, 3 }
   0x5   : > { %s549_s15 = smov (%p23_p1, %s22_s15), 0  ;;  %p170_p3 = pnand %p390_p0, %p169_p2 }
   0x6   : > { %p207_p4 = scmp.lt.s32.totalorder (!%p170_p3), %s449_s12, 1 }
   0x7   : > { %173 = sbr.rel (%p170_p3) target bundleno = 159 (0x9f), region = 32 }
   0xc   : > { %v240_v0 = vld [vmem:[%s543_s1 + $0x28] sm:$0xff]  ;;  %v239_v1 = vld [vmem:[%s543_s1 + $0x20] sm:$0xff]  ;;  %v238_v2 = vld [vmem:[%s543_s1 + $0x18] sm:$0xff]  ;;  %s551_s12 = smov (!%p207_p4, %s449_s12), 1  ;;  %vm244_vm0 = vcmask 392192  }
   0xd   : > { %399 = vmatpush.msra.mxu2 %v240_v0  ;;  %264 = vmatpush.msra.mxu0 %v240_v0  ;;  %v237_v3 = vld [vmem:[%s543_s1 + $0x10] sm:$0xff]  ;;  %s410_s24 = smul.u32 24, %s551_s12  ;;  %v236_v4 = vld [vmem:[%s543_s1 + $0x8] sm:$0xff]  ;;  %v235_v5 = vld [vmem:[%s543_s1] sm:$0xff] }
   0xe   : > { %398 = vmatpush.msra.mxu1 %v240_v0  ;;  %v241_v9 = vld [vmem:[%s544_s2] sm:$0xff]  ;;  %v242_v10 = vld [vmem:[%s544_s2 + $0x8] sm:$0xff]  ;;  %v243_v15 = vld [vmem:[%s544_s2 + $0x10] sm:$0x1] }
   0xf   : > { %401 = vmatpush.msra.mxu2 %v239_v1  ;;  %265 = vmatpush.msra.mxu0 %v239_v1  ;;  %s214_s29 = scalar_lea.vmem %s542_s0, %s410_s24  ;;  %s230_s11 = scalar_lea.vmem %s545_s3, %s410_s24 }
  0x10   : > { %400 = vmatpush.msra.mxu1 %v239_v1  ;;  %v234_v6 = vld [vmem:[%s214_s29 + $0x10] sm:$0x1]  ;;  %v232_v7 = vld [vmem:[%s214_s29] sm:$0xff]  ;;  %v233_v8 = vld [vmem:[%s214_s29 + $0x8] sm:$0xff] }
  0x11   : > { %403 = vmatpush.msra.mxu2 %v238_v2  ;;  %266 = vmatpush.msra.mxu0 %v238_v2 }
  0x12   : > { %402 = vmatpush.msra.mxu1 %v238_v2 }
  0x13   : > { %405 = vmatpush.msra.mxu2 %v237_v3  ;;  %267 = vmatpush.msra.mxu0 %v237_v3 }
  0x14   : > { %404 = vmatpush.msra.mxu1 %v237_v3 }
  0x15   : > { %407 = vmatpush.msra.mxu2 %v236_v4  ;;  %268 = vmatpush.msra.mxu0 %v236_v4 }
  0x16   : > { %406 = vmatpush.msra.mxu1 %v236_v4 }
  0x17   : > { %409 = vmatpush.msra.mxu2 %v235_v5  ;;  %269 = vmatpush.msra.mxu0 %v235_v5 }
  0x18   : > { %395 = vmatmul.msk.f32.vlgmr.msra.gmra.mxu2 %vm244_vm0, %v234_v6  ;;  %408 = vmatpush.msra.mxu1 %v235_v5 }
  0x19   : > { %393 = vmatmul.msk.f32.vlgmr.msra.gmra.mxu0 %vm244_vm0, %v232_v7  ;;  %394 = vmatmul.msk.f32.vlgmr.msra.gmra.mxu1 %vm244_vm0, %v233_v8 }
  0x96   : > { %v271_v11 = vpop.f32.mrf.mxu0  ;;  %v274_v12 = vpop.f32.mrf.mxu1 }
  0x97   : > { %v272_v13 = vadd.f32 %v271_v11, %v241_v9  ;;  %v275_v14 = vadd.f32 %v274_v12, %v242_v10 }
  0x99   : > { %280 = vst [vmem:[%s230_s11] sm:$0xff] %v272_v13 }
  0x9a   : > { %281 = vst [vmem:[%s230_s11 + $0x8] sm:$0xff] %v275_v14 }
  0x9b   : > { %v277_v16 = vpop.f32.mrf.mxu2 }
  0x9c   : > { %v278_v17 = vadd.f32 %v277_v16, %v243_v15 }
  0x9e   : > { %282 = vst [vmem:[%s230_s11 + $0x10] sm:$0x1] %v278_v17 }
  0x9f PF: > { %s13_s14 = sadd.s32 1, %s457_s14   ;;  %s546_s12 = smov %s453_s13 }
  0xa0   : > { %p10_p5 = scmp.ge.s32.totalorder %s13_s14, 4   ;;  %s547_s13 = smov %s549_s15 }
  0xa2   :  { %12 = sbr.rel (!%p10_p5) target bundleno = 2 (0x2), region = 65 }

</bundles_post_ra>
